<compile_context>
chip_gen: v5e
topology: v5e:2x2
jax: 0.10.0
libtpu: 0.0.40
codegen_flags: <defaults>
</compile_context>

<pallas_src>
import functools

import jax
import jax.numpy as jnp
from jax.experimental import pallas as pl
from jax.experimental.pallas import tpu as pltpu


def _round_up(n, m):
    return ((n + m - 1) // m) * m


def _tensorcores_per_device():
    """Best-effort TensorCore count for one Pallas call (1 on v5e/v6e, 2 on v7x)."""
    try:
        info = pltpu.get_tpu_info()
        for attr in ("num_cores", "core_count", "tensorcores_per_chip"):
            v = getattr(info, attr, None)
            if isinstance(v, int) and v > 0:
                return v
    except Exception:
        pass
    try:
        kind = jax.devices()[0].device_kind.lower()
    except Exception:
        return 1
    # Dual-TensorCore (megacore) chips benefit from >= 2 "parallel" tiles.
    if any(tag in kind for tag in ("v4", "v5p", "v7")):
        return 2
    return 1


def _single_buffer_mode():
    """pl.Buffered(1) if this jax build supports it, else None."""
    try:
        return pl.Buffered(1)
    except Exception:
        return None


def _pick_batch_tile(B, tm_max, num_tc):
    """Batch tile (multiple of 8, or the full batch) per the perf review.

    * single TC (v5e/v6e): fewest tiles possible -> least fixed per-step cost,
      ideally one tile covering the whole batch.
    * dual TC (v7x): ~2 big tiles per core so dimension_semantics=("parallel",)
      has work on both cores, capped at tm_max.
    """
    tm_max = max(8, int(tm_max))
    if B <= 8:
        return B
    if num_tc > 1:
        target = pl.cdiv(B, 2 * num_tc)
    else:
        target = B
    tm = max(8, min(tm_max, _round_up(target, 8)))
    if tm >= B:
        return B  # one full-batch block (block_shape == full dim is always legal)
    return tm


def actor_mlp_kernel(x_ref, w1_ref, b1_ref, w2_ref, b2_ref, w3_ref, b3_ref,
                     o_ref):
    """Fused 3-layer MLP on one batch tile.

    x_ref : (tm, 3*E)  f32 (cast to the weight dtype in-kernel)
    w1_ref: (3*E, H) bf16, b1_ref: (1, H) f32
    w2_ref: (H, H)   bf16, b2_ref: (1, H) f32
    w3_ref: (H, E)   bf16, b3_ref: (1, E) f32
    o_ref : (tm, E)  f32 (or bf16 if requested)
    """
    cdt = w1_ref.dtype  # matmul (MXU) dtype, typically bf16

    # In-kernel cast of the activation tile (hidden under the input DMA).
    x = x_ref[...].astype(cdt)

    # Layer 1: bf16 MXU matmul, f32 accumulate; bias + ReLU in f32.
    h1 = jnp.dot(x, w1_ref[...], preferred_element_type=jnp.float32)
    h1 = jnp.maximum(h1 + b1_ref[...], 0.0)

    # Layer 2
    h2 = jnp.dot(h1.astype(cdt), w2_ref[...], preferred_element_type=jnp.float32)
    h2 = jnp.maximum(h2 + b2_ref[...], 0.0)

    # Layer 3 + Tanh (tanh goes to the EUP slot; epilogue stays f32 for v5e).
    h3 = jnp.dot(h2.astype(cdt), w3_ref[...], preferred_element_type=jnp.float32)
    o_ref[...] = jnp.tanh(h3 + b3_ref[...]).astype(o_ref.dtype)


def actor_forward(x, params, *, tm=1024, out_dtype=jnp.float32):
    """Fused ActorNetwork forward pass via a single pallas_call.

    x: (B, 3*embedding_dim) float32 (passed to the kernel uncast, un-padded)
    params: dict with w1,b1,w2,b2,w3,b3 (weights ideally already bf16 via
            prepare_params(); they are used as-is, no per-call cast).
    out_dtype: jnp.float32 (PyTorch-matching default) or jnp.bfloat16 if the
               downstream consumer accepts it (cuts output HBM bytes in half).
    """
    w1, b1 = params["w1"], params["b1"]
    w2, b2 = params["w2"], params["b2"]
    w3, b3 = params["w3"], params["b3"]

    B, in_dim = x.shape
    H = w1.shape[1]
    E = w3.shape[1]
    assert in_dim == w1.shape[0]
    assert w2.shape == (H, H) and w3.shape[0] == H

    num_tc = _tensorcores_per_device()
    tm_eff = _pick_batch_tile(B, tm, num_tc)
    grid = (pl.cdiv(B, tm_eff),)  # ragged B: last tile is masked by Pallas

    # TODO(synk): when E < 128 the (tm, E) output store is lane-masked; prefer
    # 128-aligned feature dims in production for lane-dense stores.

    def call(resident_mode):
        def const_spec(shape):
            index_map = lambda i, _s=shape: (0,) * len(_s)
            if resident_mode is None:
                return pl.BlockSpec(shape, index_map)
            # Grid-invariant blocks: single buffer (never re-DMA'd).
            return pl.BlockSpec(shape, index_map, pipeline_mode=resident_mode)

        return pl.pallas_call(
            actor_mlp_kernel,
            out_shape=jax.ShapeDtypeStruct((B, E), out_dtype),
            grid_spec=pltpu.PrefetchScalarGridSpec(
                num_scalar_prefetch=0,
                grid=grid,
                in_specs=[
                    # batch tile of activations (f32, cast in-kernel)
                    pl.BlockSpec((tm_eff, in_dim), lambda i: (i, 0)),
                    # weights / biases: full arrays, constant index_map -> resident
                    const_spec((in_dim, H)),
                    const_spec((1, H)),
                    const_spec((H, H)),
                    const_spec((1, H)),
                    const_spec((H, E)),
                    const_spec((1, E)),
                ],
                out_specs=pl.BlockSpec((tm_eff, E), lambda i: (i, 0)),
            ),
            compiler_params=pltpu.CompilerParams(
                dimension_semantics=("parallel",)),
        )(x, w1, b1, w2, b2, w3, b3)

    mode = _single_buffer_mode()
    if mode is None:
        return call(None)
    try:
        return call(mode)
    except Exception:
        # Older jax without BlockSpec pipeline_mode / Buffered(1): perf-hygiene
        # only, so retry with default double-buffered resident blocks.
        return call(None)


def init_params(key, embedding_dim, hidden_dim):
    """Deterministic synthetic f32 params (PyTorch-like uniform fan-in init)."""
    in1, in2, in3 = 3 * embedding_dim, hidden_dim, hidden_dim
    ks = jax.random.split(key, 6)

    def lin(kw, kb, fan_in, fan_out):
        bound = 1.0 / jnp.sqrt(fan_in)
        w = jax.random.uniform(kw, (fan_in, fan_out), jnp.float32,
                               minval=-bound, maxval=bound)
        b = jax.random.uniform(kb, (1, fan_out), jnp.float32,
                               minval=-bound, maxval=bound)
        return w, b

    w1, b1 = lin(ks[0], ks[1], in1, hidden_dim)
    w2, b2 = lin(ks[2], ks[3], in2, hidden_dim)
    w3, b3 = lin(ks[4], ks[5], in3, embedding_dim)
    return {"w1": w1, "b1": b1, "w2": w2, "b2": b2, "w3": w3, "b3": b3}


def prepare_params(params, *, matmul_dtype=jnp.bfloat16):
    """Cast weights to the MXU dtype ONCE; store/reuse the result across calls."""
    out = dict(params)
    for k in ("w1", "w2", "w3"):
        out[k] = params[k].astype(matmul_dtype)
    for k in ("b1", "b2", "b3"):
        out[k] = params[k].astype(jnp.float32)
    return out


def actor_forward_ref(x, p, *, operand_dtype=jnp.float32, precision=None):
    """Pure-JAX reference (same semantics as the PyTorch module)."""
    dot = functools.partial(jnp.dot, preferred_element_type=jnp.float32,
                            precision=precision)

    def lin(v, w, b):
        return dot(v.astype(operand_dtype), w.astype(operand_dtype)) + b

    h = jnp.maximum(lin(x, p["w1"], p["b1"]), 0.0)
    h = jnp.maximum(lin(h, p["w2"], p["b2"]), 0.0)
    return jnp.tanh(lin(h, p["w3"], p["b3"]))


if __name__ == "__main__":
    # Small demo shapes (production would use 128-aligned feature dims and a
    # large batch so tm=1024 tiles hit the HBM roofline).
    embedding_dim = 32
    hidden_dim = 32
    batch = 24

    key = jax.random.PRNGKey(0)
    k_params, k_x = jax.random.split(key)

    params_f32 = init_params(k_params, embedding_dim, hidden_dim)
    params = prepare_params(params_f32)      # bf16 weights, cast exactly once
    x = jax.random.normal(k_x, (batch, 3 * embedding_dim), jnp.float32)

    out = jax.block_until_ready(actor_forward(x, params))
    assert out.shape == (batch, embedding_dim)
    assert bool(jnp.all(jnp.isfinite(out)))

    # Tight check vs a reference using the same bf16 matmul operands.
    ref_bf16 = actor_forward_ref(x, params_f32, operand_dtype=jnp.bfloat16)
    err_bf16 = float(jnp.max(jnp.abs(out - ref_bf16)))
    assert err_bf16 < 1e-3, f"mismatch vs bf16-operand reference: {err_bf16}"

    # Looser check vs the full-f32 reference (bf16 operand rounding only).
    ref_f32 = actor_forward_ref(x, params_f32, precision="highest")
    err_f32 = float(jnp.max(jnp.abs(out - ref_f32)))
    assert err_f32 < 5e-2, f"mismatch vs f32 reference: {err_f32}"

    # Ragged batch (not a multiple of 8 / of the tile): exercises the
    # no-pad path where Pallas masks the partial last-tile store.
    x_rag = jax.random.normal(jax.random.PRNGKey(1),
                              (13, 3 * embedding_dim), jnp.float32)
    out_rag = jax.block_until_ready(actor_forward(x_rag, params))
    assert out_rag.shape == (13, embedding_dim)
    ref_rag = actor_forward_ref(x_rag, params_f32, operand_dtype=jnp.bfloat16)
    err_rag = float(jnp.max(jnp.abs(out_rag - ref_rag)))
    assert err_rag < 1e-3, f"ragged-batch mismatch: {err_rag}"

    print("KERNEL_OK")
</pallas_src>

<mosaic_0001>
module attributes {stable_mosaic.version = 11 : i64} {
  func.func @actor_mlp_kernel(%arg0: i32, %arg1: memref<24x96xf32, #tpu.memory_space<vmem>>, %arg2: memref<96x32xbf16, #tpu.memory_space<vmem>>, %arg3: memref<1x32xf32, #tpu.memory_space<vmem>>, %arg4: memref<32x32xbf16, #tpu.memory_space<vmem>>, %arg5: memref<1x32xf32, #tpu.memory_space<vmem>>, %arg6: memref<32x32xbf16, #tpu.memory_space<vmem>>, %arg7: memref<1x32xf32, #tpu.memory_space<vmem>>, %arg8: memref<24x32xf32, #tpu.memory_space<vmem>>) attributes {dimension_semantics = [#tpu.dimension_semantics<parallel>], iteration_bounds = array<i64: 1>, scalar_prefetch = 0 : i64, scratch_operands = 0 : i64, tpu.core_type = #tpu.core_type<tc>, window_params = [{transform_indices = @transform_0, window_bounds = array<i64: 24, 96>}, {pipeline_mode = #tpu.pipeline_mode<synchronous>, transform_indices = @transform_1, window_bounds = array<i64: 96, 32>}, {pipeline_mode = #tpu.pipeline_mode<synchronous>, transform_indices = @transform_2, window_bounds = array<i64: 1, 32>}, {pipeline_mode = #tpu.pipeline_mode<synchronous>, transform_indices = @transform_3, window_bounds = array<i64: 32, 32>}, {pipeline_mode = #tpu.pipeline_mode<synchronous>, transform_indices = @transform_4, window_bounds = array<i64: 1, 32>}, {pipeline_mode = #tpu.pipeline_mode<synchronous>, transform_indices = @transform_5, window_bounds = array<i64: 32, 32>}, {pipeline_mode = #tpu.pipeline_mode<synchronous>, transform_indices = @transform_6, window_bounds = array<i64: 1, 32>}, {transform_indices = @transform_7, window_bounds = array<i64: 24, 32>}]} {
    %c0 = arith.constant 0 : index
    %c0_0 = arith.constant 0 : index
    %0 = vector.load %arg1[%c0, %c0_0] : memref<24x96xf32, #tpu.memory_space<vmem>>, vector<24x96xf32>
    %1 = arith.truncf %0 : vector<24x96xf32> to vector<24x96xbf16>
    %c0_1 = arith.constant 0 : index
    %c0_2 = arith.constant 0 : index
    %2 = vector.load %arg2[%c0_1, %c0_2] : memref<96x32xbf16, #tpu.memory_space<vmem>>, vector<96x32xbf16>
    %cst = arith.constant dense<0.000000e+00> : vector<24x32xf32>
    %3 = tpu.matmul %1, %2, %cst {dimension_numbers = #tpu.dot_dimension_numbers<[1], [0], [0], [1], [0, 0, 1, 1], [], []>} : vector<24x96xbf16>, vector<96x32xbf16>, vector<24x32xf32> -> vector<24x32xf32>
    %c0_3 = arith.constant 0 : index
    %c0_4 = arith.constant 0 : index
    %4 = vector.load %arg3[%c0_3, %c0_4] : memref<1x32xf32, #tpu.memory_space<vmem>>, vector<1x32xf32>
    %5 = vector.broadcast %4 : vector<1x32xf32> to vector<24x32xf32>
    %6 = arith.addf %3, %5 : vector<24x32xf32>
    %cst_5 = arith.constant 0.000000e+00 : f32
    %7 = vector.broadcast %cst_5 : f32 to vector<24x32xf32>
    %8 = arith.maximumf %6, %7 : vector<24x32xf32>
    %9 = arith.truncf %8 : vector<24x32xf32> to vector<24x32xbf16>
    %c0_6 = arith.constant 0 : index
    %c0_7 = arith.constant 0 : index
    %10 = vector.load %arg4[%c0_6, %c0_7] : memref<32x32xbf16, #tpu.memory_space<vmem>>, vector<32x32xbf16>
    %cst_8 = arith.constant dense<0.000000e+00> : vector<24x32xf32>
    %11 = tpu.matmul %9, %10, %cst_8 {dimension_numbers = #tpu.dot_dimension_numbers<[1], [0], [0], [1], [0, 0, 1, 1], [], []>} : vector<24x32xbf16>, vector<32x32xbf16>, vector<24x32xf32> -> vector<24x32xf32>
    %c0_9 = arith.constant 0 : index
    %c0_10 = arith.constant 0 : index
    %12 = vector.load %arg5[%c0_9, %c0_10] : memref<1x32xf32, #tpu.memory_space<vmem>>, vector<1x32xf32>
    %13 = vector.broadcast %12 : vector<1x32xf32> to vector<24x32xf32>
    %14 = arith.addf %11, %13 : vector<24x32xf32>
    %cst_11 = arith.constant 0.000000e+00 : f32
    %15 = vector.broadcast %cst_11 : f32 to vector<24x32xf32>
    %16 = arith.maximumf %14, %15 : vector<24x32xf32>
    %17 = arith.truncf %16 : vector<24x32xf32> to vector<24x32xbf16>
    %c0_12 = arith.constant 0 : index
    %c0_13 = arith.constant 0 : index
    %18 = vector.load %arg6[%c0_12, %c0_13] : memref<32x32xbf16, #tpu.memory_space<vmem>>, vector<32x32xbf16>
    %cst_14 = arith.constant dense<0.000000e+00> : vector<24x32xf32>
    %19 = tpu.matmul %17, %18, %cst_14 {dimension_numbers = #tpu.dot_dimension_numbers<[1], [0], [0], [1], [0, 0, 1, 1], [], []>} : vector<24x32xbf16>, vector<32x32xbf16>, vector<24x32xf32> -> vector<24x32xf32>
    %c0_15 = arith.constant 0 : index
    %c0_16 = arith.constant 0 : index
    %20 = vector.load %arg7[%c0_15, %c0_16] : memref<1x32xf32, #tpu.memory_space<vmem>>, vector<1x32xf32>
    %21 = vector.broadcast %20 : vector<1x32xf32> to vector<24x32xf32>
    %22 = arith.addf %19, %21 : vector<24x32xf32>
    %23 = math.tanh %22 : vector<24x32xf32>
    %c0_17 = arith.constant 0 : index
    %c0_18 = arith.constant 0 : index
    %24 = vector.load %arg8[%c0_17, %c0_18] : memref<24x32xf32, #tpu.memory_space<vmem>>, vector<24x32xf32>
    tpu.vector_store %arg8[%c0_17, %c0_18], %23 {strides = array<i32>} : memref<24x32xf32, #tpu.memory_space<vmem>>, vector<24x32xf32>,
    return
  }
  func.func @transform_0(%arg0: i32) -> (i32, i32) {
    %c0_i32 = arith.constant 0 : i32
    %c0_i32_0 = arith.constant 0 : i32
    return %arg0, %c0_i32 : i32, i32
  }
  func.func @transform_1(%arg0: i32) -> (i32, i32) {
    %c0_i32 = arith.constant 0 : i32
    %c0_i32_0 = arith.constant 0 : i32
    %c0_i32_1 = arith.constant 0 : i32
    return %c0_i32, %c0_i32_0 : i32, i32
  }
  func.func @transform_2(%arg0: i32) -> (i32, i32) {
    %c0_i32 = arith.constant 0 : i32
    %c0_i32_0 = arith.constant 0 : i32
    %c0_i32_1 = arith.constant 0 : i32
    return %c0_i32, %c0_i32_0 : i32, i32
  }
  func.func @transform_3(%arg0: i32) -> (i32, i32) {
    %c0_i32 = arith.constant 0 : i32
    %c0_i32_0 = arith.constant 0 : i32
    %c0_i32_1 = arith.constant 0 : i32
    return %c0_i32, %c0_i32_0 : i32, i32
  }
  func.func @transform_4(%arg0: i32) -> (i32, i32) {
    %c0_i32 = arith.constant 0 : i32
    %c0_i32_0 = arith.constant 0 : i32
    %c0_i32_1 = arith.constant 0 : i32
    return %c0_i32, %c0_i32_0 : i32, i32
  }
  func.func @transform_5(%arg0: i32) -> (i32, i32) {
    %c0_i32 = arith.constant 0 : i32
    %c0_i32_0 = arith.constant 0 : i32
    %c0_i32_1 = arith.constant 0 : i32
    return %c0_i32, %c0_i32_0 : i32, i32
  }
  func.func @transform_6(%arg0: i32) -> (i32, i32) {
    %c0_i32 = arith.constant 0 : i32
    %c0_i32_0 = arith.constant 0 : i32
    %c0_i32_1 = arith.constant 0 : i32
    return %c0_i32, %c0_i32_0 : i32, i32
  }
  func.func @transform_7(%arg0: i32) -> (i32, i32) {
    %c0_i32 = arith.constant 0 : i32
    %c0_i32_0 = arith.constant 0 : i32
    return %arg0, %c0_i32 : i32, i32
  }
}

module attributes {stable_mosaic.version = 11 : i64} {
  func.func @actor_mlp_kernel(%arg0: i32, %arg1: memref<24x96xf32, #tpu.memory_space<vmem>>, %arg2: memref<96x32xbf16, #tpu.memory_space<vmem>>, %arg3: memref<1x32xf32, #tpu.memory_space<vmem>>, %arg4: memref<32x32xbf16, #tpu.memory_space<vmem>>, %arg5: memref<1x32xf32, #tpu.memory_space<vmem>>, %arg6: memref<32x32xbf16, #tpu.memory_space<vmem>>, %arg7: memref<1x32xf32, #tpu.memory_space<vmem>>, %arg8: memref<24x32xf32, #tpu.memory_space<vmem>>) attributes {dimension_semantics = [#tpu.dimension_semantics<parallel>], iteration_bounds = array<i64: 1>, scalar_prefetch = 0 : i64, scratch_operands = 0 : i64, tpu.core_type = #tpu.core_type<tc>, window_params = [{transform_indices = @transform_0, window_bounds = array<i64: 24, 96>}, {pipeline_mode = #tpu.pipeline_mode<synchronous>, transform_indices = @transform_1, window_bounds = array<i64: 96, 32>}, {pipeline_mode = #tpu.pipeline_mode<synchronous>, transform_indices = @transform_2, window_bounds = array<i64: 1, 32>}, {pipeline_mode = #tpu.pipeline_mode<synchronous>, transform_indices = @transform_3, window_bounds = array<i64: 32, 32>}, {pipeline_mode = #tpu.pipeline_mode<synchronous>, transform_indices = @transform_4, window_bounds = array<i64: 1, 32>}, {pipeline_mode = #tpu.pipeline_mode<synchronous>, transform_indices = @transform_5, window_bounds = array<i64: 32, 32>}, {pipeline_mode = #tpu.pipeline_mode<synchronous>, transform_indices = @transform_6, window_bounds = array<i64: 1, 32>}, {transform_indices = @transform_7, window_bounds = array<i64: 24, 32>}]} {
    %c0 = arith.constant 0 : index
    %c0_0 = arith.constant 0 : index
    %0 = vector.load %arg1[%c0, %c0_0] : memref<24x96xf32, #tpu.memory_space<vmem>>, vector<24x96xf32>
    %1 = arith.truncf %0 : vector<24x96xf32> to vector<24x96xbf16>
    %c0_1 = arith.constant 0 : index
    %c0_2 = arith.constant 0 : index
    %2 = vector.load %arg2[%c0_1, %c0_2] : memref<96x32xbf16, #tpu.memory_space<vmem>>, vector<96x32xbf16>
    %cst = arith.constant dense<0.000000e+00> : vector<24x32xf32>
    %3 = tpu.matmul %1, %2, %cst {dimension_numbers = #tpu.dot_dimension_numbers<[1], [0], [0], [1], [0, 0, 1, 1], [], []>} : vector<24x96xbf16>, vector<96x32xbf16>, vector<24x32xf32> -> vector<24x32xf32>
    %c0_3 = arith.constant 0 : index
    %c0_4 = arith.constant 0 : index
    %4 = vector.load %arg3[%c0_3, %c0_4] : memref<1x32xf32, #tpu.memory_space<vmem>>, vector<1x32xf32>
    %5 = vector.broadcast %4 : vector<1x32xf32> to vector<24x32xf32>
    %6 = arith.addf %3, %5 : vector<24x32xf32>
    %cst_5 = arith.constant 0.000000e+00 : f32
    %7 = vector.broadcast %cst_5 : f32 to vector<24x32xf32>
    %8 = arith.maximumf %6, %7 : vector<24x32xf32>
    %9 = arith.truncf %8 : vector<24x32xf32> to vector<24x32xbf16>
    %c0_6 = arith.constant 0 : index
    %c0_7 = arith.constant 0 : index
    %10 = vector.load %arg4[%c0_6, %c0_7] : memref<32x32xbf16, #tpu.memory_space<vmem>>, vector<32x32xbf16>
    %cst_8 = arith.constant dense<0.000000e+00> : vector<24x32xf32>
    %11 = tpu.matmul %9, %10, %cst_8 {dimension_numbers = #tpu.dot_dimension_numbers<[1], [0], [0], [1], [0, 0, 1, 1], [], []>} : vector<24x32xbf16>, vector<32x32xbf16>, vector<24x32xf32> -> vector<24x32xf32>
    %c0_9 = arith.constant 0 : index
    %c0_10 = arith.constant 0 : index
    %12 = vector.load %arg5[%c0_9, %c0_10] : memref<1x32xf32, #tpu.memory_space<vmem>>, vector<1x32xf32>
    %13 = vector.broadcast %12 : vector<1x32xf32> to vector<24x32xf32>
    %14 = arith.addf %11, %13 : vector<24x32xf32>
    %cst_11 = arith.constant 0.000000e+00 : f32
    %15 = vector.broadcast %cst_11 : f32 to vector<24x32xf32>
    %16 = arith.maximumf %14, %15 : vector<24x32xf32>
    %17 = arith.truncf %16 : vector<24x32xf32> to vector<24x32xbf16>
    %c0_12 = arith.constant 0 : index
    %c0_13 = arith.constant 0 : index
    %18 = vector.load %arg6[%c0_12, %c0_13] : memref<32x32xbf16, #tpu.memory_space<vmem>>, vector<32x32xbf16>
    %cst_14 = arith.constant dense<0.000000e+00> : vector<24x32xf32>
    %19 = tpu.matmul %17, %18, %cst_14 {dimension_numbers = #tpu.dot_dimension_numbers<[1], [0], [0], [1], [0, 0, 1, 1], [], []>} : vector<24x32xbf16>, vector<32x32xbf16>, vector<24x32xf32> -> vector<24x32xf32>
    %c0_15 = arith.constant 0 : index
    %c0_16 = arith.constant 0 : index
    %20 = vector.load %arg7[%c0_15, %c0_16] : memref<1x32xf32, #tpu.memory_space<vmem>>, vector<1x32xf32>
    %21 = vector.broadcast %20 : vector<1x32xf32> to vector<24x32xf32>
    %22 = arith.addf %19, %21 : vector<24x32xf32>
    %23 = math.tanh %22 : vector<24x32xf32>
    %c0_17 = arith.constant 0 : index
    %c0_18 = arith.constant 0 : index
    %24 = vector.load %arg8[%c0_17, %c0_18] : memref<24x32xf32, #tpu.memory_space<vmem>>, vector<24x32xf32>
    tpu.vector_store %arg8[%c0_17, %c0_18], %23 {strides = array<i32>} : memref<24x32xf32, #tpu.memory_space<vmem>>, vector<24x32xf32>,
    return
  }
  func.func @transform_0(%arg0: i32) -> (i32, i32) {
    %c0_i32 = arith.constant 0 : i32
    %c0_i32_0 = arith.constant 0 : i32
    return %arg0, %c0_i32 : i32, i32
  }
  func.func @transform_1(%arg0: i32) -> (i32, i32) {
    %c0_i32 = arith.constant 0 : i32
    %c0_i32_0 = arith.constant 0 : i32
    %c0_i32_1 = arith.constant 0 : i32
    return %c0_i32, %c0_i32_0 : i32, i32
  }
  func.func @transform_2(%arg0: i32) -> (i32, i32) {
    %c0_i32 = arith.constant 0 : i32
    %c0_i32_0 = arith.constant 0 : i32
    %c0_i32_1 = arith.constant 0 : i32
    return %c0_i32, %c0_i32_0 : i32, i32
  }
  func.func @transform_3(%arg0: i32) -> (i32, i32) {
    %c0_i32 = arith.constant 0 : i32
    %c0_i32_0 = arith.constant 0 : i32
    %c0_i32_1 = arith.constant 0 : i32
    return %c0_i32, %c0_i32_0 : i32, i32
  }
  func.func @transform_4(%arg0: i32) -> (i32, i32) {
    %c0_i32 = arith.constant 0 : i32
    %c0_i32_0 = arith.constant 0 : i32
    %c0_i32_1 = arith.constant 0 : i32
    return %c0_i32, %c0_i32_0 : i32, i32
  }
  func.func @transform_5(%arg0: i32) -> (i32, i32) {
    %c0_i32 = arith.constant 0 : i32
    %c0_i32_0 = arith.constant 0 : i32
    %c0_i32_1 = arith.constant 0 : i32
    return %c0_i32, %c0_i32_0 : i32, i32
  }
  func.func @transform_6(%arg0: i32) -> (i32, i32) {
    %c0_i32 = arith.constant 0 : i32
    %c0_i32_0 = arith.constant 0 : i32
    %c0_i32_1 = arith.constant 0 : i32
    return %c0_i32, %c0_i32_0 : i32, i32
  }
  func.func @transform_7(%arg0: i32) -> (i32, i32) {
    %c0_i32 = arith.constant 0 : i32
    %c0_i32_0 = arith.constant 0 : i32
    return %arg0, %c0_i32 : i32, i32
  }
}

</mosaic_0001>

<bundles_post_ra>
// kernel: tpu_custom_call.1
= control target key start
LH: loop header
LB: loop body
LE: loop exit
PB: predicated region body
PF: predicated region fallthrough
CT: control target
= control target key end

     0   :  { %s434_s0 = inlined_call_operand.vmem [shape: f32[24,96], index: 0, kind: input, shape index: {}]   ;;  %s435_s1 = inlined_call_operand.vmem [shape: bf16[96,32], index: 1, kind: input, shape index: {}]   ;;  %s436_s2 = inlined_call_operand.vmem [shape: f32[1,32], index: 2, kind: input, shape index: {}]   ;;  %s437_s3 = inlined_call_operand.vmem [shape: bf16[32,32], index: 3, kind: input, shape index: {}]   ;;  %s438_s4 = inlined_call_operand.vmem [shape: f32[1,32], index: 4, kind: input, shape index: {}]   ;;  %s439_s5 = inlined_call_operand.vmem [shape: bf16[32,32], index: 5, kind: input, shape index: {}]   ;;  %s440_s6 = inlined_call_operand.vmem [shape: f32[1,32], index: 6, kind: input, shape index: {}]   ;;  %s441_s7 = inlined_call_operand.hbm [shape: f32[24,32], index: 7, kind: output, shape index: {}]  }
   0x1   :  { %v284_v0 = vld [vmem:[%s435_s1 + $0x28] sm:$0xff]  ;;  %v283_v1 = vld [vmem:[%s435_s1 + $0x20] sm:$0xff] }
   0x2   :  { %94 = vmatpush.bf16.msra.mxu0 %v284_v0  ;;  %289 = vmatpush.bf16.msra.mxu3 %v284_v0 }
   0x3   :  { %12 = vsyncpa [#allocation3], 0  ;;  %v282_v2 = vld [vmem:[%s435_s1 + $0x18] sm:$0xff]  ;;  %v281_v3 = vld [vmem:[%s435_s1 + $0x10] sm:$0xff]  ;;  %vm85_vm0 = vcmask 785408   ;;  %vm135_vm1 = vcmask 261120  }
   0x4   :  { %v280_v4 = vld [vmem:[%s435_s1 + $0x8] sm:$0xff]  ;;  %v279_v5 = vld [vmem:[%s435_s1] sm:$0xff]  ;;  %v30_v8 = vld [vmem:[%s434_s0 + $0x10] sm:$0xff]  ;;  %s334_s8 = smov 128   ;;  %s335_s9 = smov 8  }
   0x5   :  { %v28_v6 = vld [vmem:[%s434_s0] sm:$0xff]  ;;  %v29_v7 = vld [vmem:[%s434_s0 + $0x8] sm:$0xff]  ;;  %v32_v10 = vpack.c.bf16 %v30_v8, %v30_v8 }
   0x6   :  { %95 = vmatpush.bf16.msra.mxu0 %v283_v1  ;;  %290 = vmatpush.bf16.msra.mxu3 %v283_v1  ;;  %v31_v9 = vpack.c.bf16 %v29_v7, %v28_v6  ;;  %v286_v11 = vld [vmem:[%s437_s3 + $0x8] sm:$0xff]  ;;  %v285_v12 = vld [vmem:[%s437_s3] sm:$0xff] }
   0x7   :  { %148 = vmatpush.bf16.msra.mxu1 %v286_v11  ;;  %v298_v14 = vld [vmem:[%s436_s2] ss:$0 sm:$0xff]  ;;  %v288_v26 = vld [vmem:[%s439_s5 + $0x8] sm:$0xff] }
   0x8   :  { %197 = vmatpush.bf16.msra.mxu2 %v288_v26  ;;  %v287_v27 = vld [vmem:[%s439_s5] sm:$0xff] }
   0x9   :  { %v299_v29 = vld [vmem:[%s438_s4] ss:$0 sm:$0xff]  ;;  %s333_s4 = smov [#allocation2]  }
   0xa   :  { %96 = vmatpush.bf16.msra.mxu0 %v282_v2  ;;  %291 = vmatpush.bf16.msra.mxu3 %v282_v2  ;;  %v300_v41 = vld [vmem:[%s440_s6] ss:$0 sm:$0xff]  ;;  %s219_s28 = sshll.u32 %s333_s4, 4  ;;  %s221_s6 = sshll.u32 %s441_s7, 4  ;;  %s220_s28 = int_to_ptr.vmem [resolvable:$true] %s219_s28  ;;  %s222_s6 = int_to_ptr.hbm [resolvable:$true] %s221_s6 }
   0xb   :  { %149 = vmatpush.bf16.msra.mxu1 %v285_v12 }
   0xc   :  { %198 = vmatpush.bf16.msra.mxu2 %v287_v27 }
   0xe   :  { %97 = vmatpush.bf16.msra.mxu0 %v281_v3  ;;  %292 = vmatpush.bf16.msra.mxu3 %v281_v3 }
  0x12   :  { %98 = vmatpush.bf16.msra.mxu0 %v280_v4  ;;  %293 = vmatpush.bf16.msra.mxu3 %v280_v4 }
  0x16   :  { %99 = vmatpush.bf16.msra.mxu0 %v279_v5  ;;  %294 = vmatpush.bf16.msra.mxu3 %v279_v5 }
  0x19   :  { %257 = vmatmul.msk.bf16.vlgmr.msra.gmra.mxu0 %vm85_vm0, %v31_v9  ;;  %258 = vmatmul.msk.bf16.vlgmr.msra.gmra.mxu3 %vm85_vm0, %v32_v10 }
  0x96   :  { %v101_v13 = vpop.f32.mrf.mxu0 }
  0x97   :  { %v102_v16 = vadd.f32 %v298_v14, %v101_v13 }
  0x99   :  { %v110_v19 = vmax.f32 %v102_v16, 0.0 }
  0x9c   :  { %v106_v15 = vpop.f32.mrf.mxu3 }
  0x9d   :  { %v107_v23 = vadd.f32 %v298_v14, %v106_v15 }
  0x9e   :  { %v103_v17 = vpop.f32.mrf.mxu0 }
  0x9f   :  { %v104_v18 = vadd.f32 %v298_v14, %v103_v17  ;;  %v112_v24 = vmax.f32 %v107_v23, 0.0 }
  0xa1   :  { %v111_v20 = vmax.f32 %v104_v18, 0.0  ;;  %v114_v25 = vpack.c.bf16 %v112_v24, %v112_v24 }
  0xa3   :  { %v113_v21 = vpack.c.bf16 %v111_v20, %v110_v19 }
  0xa4   :  { %v108_v22 = vpop.f32.mrf.mxu3 }
  0xa5   :  { %267 = vmatmul.msk.bf16.vlgmr.msra.gmra.mxu1 %vm135_vm1, %v113_v21 }
  0xb5   :  { %268 = vmatmul.msk.bf16.gmra.mxu1 %vm135_vm1, %v114_v25 }
 0x122   :  { %v151_v28 = vpop.f32.mrf.mxu1 }
 0x123   :  { %v152_v30 = vadd.f32 %v299_v29, %v151_v28 }
 0x125   :  { %v160_v33 = vmax.f32 %v152_v30, 0.0 }
 0x12a   :  { %v153_v31 = vpop.f32.mrf.mxu1 }
 0x12b   :  { %v154_v32 = vadd.f32 %v299_v29, %v153_v31 }
 0x12d   :  { %v161_v34 = vmax.f32 %v154_v32, 0.0 }
 0x12f   :  { %v163_v35 = vpack.c.bf16 %v161_v34, %v160_v33 }
 0x131   :  { %277 = vmatmul.msk.bf16.vlgmr.msra.gmra.mxu2 %vm135_vm1, %v163_v35 }
 0x132   :  { %v156_v36 = vpop.f32.mrf.mxu1 }
 0x133   :  { %v157_v37 = vadd.f32 %v299_v29, %v156_v36 }
 0x135   :  { %v162_v38 = vmax.f32 %v157_v37, 0.0 }
 0x137   :  { %v164_v40 = vpack.c.bf16 %v162_v38, %v162_v38 }
 0x13a   :  { %v158_v39 = vpop.f32.mrf.mxu1 }
 0x141   :  { %278 = vmatmul.msk.bf16.gmra.mxu2 %vm135_vm1, %v164_v40 }
 0x1b4   :  { %v200_v42 = vpop.f32.mrf.mxu2 }
 0x1b5   :  { %v201_v43 = vadd.f32 %v300_v41, %v200_v42 }
 0x1b7   :  { %301 = vtanh.f32 %v201_v43 }
 0x1bc   :  { %v202_v44 = vpop.f32.mrf.mxu2 }
 0x1bd   :  { %v302_v45 = vpop.eup %301  ;;  %v203_v46 = vadd.f32 %v300_v41, %v202_v44 }
 0x1be   :  { %212 = vst.msk [vmem:[#allocation2] sm:$0xff] %vm135_vm1, %v302_v45 }
 0x1bf   :  { %303 = vtanh.f32 %v203_v46 }
 0x1c4   :  { %v205_v47 = vpop.f32.mrf.mxu2 }
 0x1c5   :  { %v304_v48 = vpop.eup %303  ;;  %v206_v49 = vadd.f32 %v300_v41, %v205_v47 }
 0x1c6   :  { %213 = vst.msk [vmem:[#allocation2 + $0x8] sm:$0xff] %vm135_vm1, %v304_v48 }
 0x1c7   :  { %305 = vtanh.f32 %v206_v49 }
 0x1cc   :  { %v207_v50 = vpop.f32.mrf.mxu2 }
 0x1cd   :  { %v306_v51 = vpop.eup %305 }
 0x1ce   :  { %214 = vst.msk [vmem:[#allocation2 + $0x10] sm:$0xff] %vm135_vm1, %v306_v51 }
 0x1cf   :  { %227 = dma.vmem_to_hbm [thread:$0]  %s220_s28, 384, %s222_s6, [#allocation3], %s334_s8, %s334_s8, %s335_s9  }
 0x1d0   :  { %331 = dma.done.wait [#allocation3], 384  }
 0x1d1   :  { %332 = vsyncadd [#allocation3], 4294966912 }
 0x1d2   :  { %232 = vsyncpa [#allocation3], 1 }

// kernel: tpu_custom_call.1
= control target key start
LH: loop header
LB: loop body
LE: loop exit
PB: predicated region body
PF: predicated region fallthrough
CT: control target
= control target key end

     0   :  { %s434_s0 = inlined_call_operand.vmem [shape: f32[24,96], index: 0, kind: input, shape index: {}]   ;;  %s435_s1 = inlined_call_operand.vmem [shape: bf16[96,32], index: 1, kind: input, shape index: {}]   ;;  %s436_s2 = inlined_call_operand.vmem [shape: f32[1,32], index: 2, kind: input, shape index: {}]   ;;  %s437_s3 = inlined_call_operand.vmem [shape: bf16[32,32], index: 3, kind: input, shape index: {}]   ;;  %s438_s4 = inlined_call_operand.vmem [shape: f32[1,32], index: 4, kind: input, shape index: {}]   ;;  %s439_s5 = inlined_call_operand.vmem [shape: bf16[32,32], index: 5, kind: input, shape index: {}]   ;;  %s440_s6 = inlined_call_operand.vmem [shape: f32[1,32], index: 6, kind: input, shape index: {}]   ;;  %s441_s7 = inlined_call_operand.hbm [shape: f32[24,32], index: 7, kind: output, shape index: {}]  }
   0x1   :  { %v284_v0 = vld [vmem:[%s435_s1 + $0x28] sm:$0xff]  ;;  %v283_v1 = vld [vmem:[%s435_s1 + $0x20] sm:$0xff] }
   0x2   :  { %94 = vmatpush.bf16.msra.mxu0 %v284_v0  ;;  %289 = vmatpush.bf16.msra.mxu3 %v284_v0 }
   0x3   :  { %12 = vsyncpa [#allocation3], 0  ;;  %v282_v2 = vld [vmem:[%s435_s1 + $0x18] sm:$0xff]  ;;  %v281_v3 = vld [vmem:[%s435_s1 + $0x10] sm:$0xff]  ;;  %vm85_vm0 = vcmask 785408   ;;  %vm135_vm1 = vcmask 261120  }
   0x4   :  { %v280_v4 = vld [vmem:[%s435_s1 + $0x8] sm:$0xff]  ;;  %v279_v5 = vld [vmem:[%s435_s1] sm:$0xff]  ;;  %v30_v8 = vld [vmem:[%s434_s0 + $0x10] sm:$0xff]  ;;  %s334_s8 = smov 128   ;;  %s335_s9 = smov 8  }
   0x5   :  { %v28_v6 = vld [vmem:[%s434_s0] sm:$0xff]  ;;  %v29_v7 = vld [vmem:[%s434_s0 + $0x8] sm:$0xff]  ;;  %v32_v10 = vpack.c.bf16 %v30_v8, %v30_v8 }
   0x6   :  { %95 = vmatpush.bf16.msra.mxu0 %v283_v1  ;;  %290 = vmatpush.bf16.msra.mxu3 %v283_v1  ;;  %v31_v9 = vpack.c.bf16 %v29_v7, %v28_v6  ;;  %v286_v11 = vld [vmem:[%s437_s3 + $0x8] sm:$0xff]  ;;  %v285_v12 = vld [vmem:[%s437_s3] sm:$0xff] }
   0x7   :  { %148 = vmatpush.bf16.msra.mxu1 %v286_v11  ;;  %v298_v14 = vld [vmem:[%s436_s2] ss:$0 sm:$0xff]  ;;  %v288_v26 = vld [vmem:[%s439_s5 + $0x8] sm:$0xff] }
   0x8   :  { %197 = vmatpush.bf16.msra.mxu2 %v288_v26  ;;  %v287_v27 = vld [vmem:[%s439_s5] sm:$0xff] }
   0x9   :  { %v299_v29 = vld [vmem:[%s438_s4] ss:$0 sm:$0xff]  ;;  %s333_s4 = smov [#allocation2]  }
   0xa   :  { %96 = vmatpush.bf16.msra.mxu0 %v282_v2  ;;  %291 = vmatpush.bf16.msra.mxu3 %v282_v2  ;;  %v300_v41 = vld [vmem:[%s440_s6] ss:$0 sm:$0xff]  ;;  %s219_s28 = sshll.u32 %s333_s4, 4  ;;  %s221_s6 = sshll.u32 %s441_s7, 4  ;;  %s220_s28 = int_to_ptr.vmem [resolvable:$true] %s219_s28  ;;  %s222_s6 = int_to_ptr.hbm [resolvable:$true] %s221_s6 }
   0xb   :  { %149 = vmatpush.bf16.msra.mxu1 %v285_v12 }
   0xc   :  { %198 = vmatpush.bf16.msra.mxu2 %v287_v27 }
   0xe   :  { %97 = vmatpush.bf16.msra.mxu0 %v281_v3  ;;  %292 = vmatpush.bf16.msra.mxu3 %v281_v3 }
  0x12   :  { %98 = vmatpush.bf16.msra.mxu0 %v280_v4  ;;  %293 = vmatpush.bf16.msra.mxu3 %v280_v4 }
  0x16   :  { %99 = vmatpush.bf16.msra.mxu0 %v279_v5  ;;  %294 = vmatpush.bf16.msra.mxu3 %v279_v5 }
  0x19   :  { %257 = vmatmul.msk.bf16.vlgmr.msra.gmra.mxu0 %vm85_vm0, %v31_v9  ;;  %258 = vmatmul.msk.bf16.vlgmr.msra.gmra.mxu3 %vm85_vm0, %v32_v10 }
  0x96   :  { %v101_v13 = vpop.f32.mrf.mxu0 }
  0x97   :  { %v102_v16 = vadd.f32 %v298_v14, %v101_v13 }
  0x99   :  { %v110_v19 = vmax.f32 %v102_v16, 0.0 }
  0x9c   :  { %v106_v15 = vpop.f32.mrf.mxu3 }
  0x9d   :  { %v107_v23 = vadd.f32 %v298_v14, %v106_v15 }
  0x9e   :  { %v103_v17 = vpop.f32.mrf.mxu0 }
  0x9f   :  { %v104_v18 = vadd.f32 %v298_v14, %v103_v17  ;;  %v112_v24 = vmax.f32 %v107_v23, 0.0 }
  0xa1   :  { %v111_v20 = vmax.f32 %v104_v18, 0.0  ;;  %v114_v25 = vpack.c.bf16 %v112_v24, %v112_v24 }
  0xa3   :  { %v113_v21 = vpack.c.bf16 %v111_v20, %v110_v19 }
  0xa4   :  { %v108_v22 = vpop.f32.mrf.mxu3 }
  0xa5   :  { %267 = vmatmul.msk.bf16.vlgmr.msra.gmra.mxu1 %vm135_vm1, %v113_v21 }
  0xb5   :  { %268 = vmatmul.msk.bf16.gmra.mxu1 %vm135_vm1, %v114_v25 }
 0x122   :  { %v151_v28 = vpop.f32.mrf.mxu1 }
 0x123   :  { %v152_v30 = vadd.f32 %v299_v29, %v151_v28 }
 0x125   :  { %v160_v33 = vmax.f32 %v152_v30, 0.0 }
 0x12a   :  { %v153_v31 = vpop.f32.mrf.mxu1 }
 0x12b   :  { %v154_v32 = vadd.f32 %v299_v29, %v153_v31 }
 0x12d   :  { %v161_v34 = vmax.f32 %v154_v32, 0.0 }
 0x12f   :  { %v163_v35 = vpack.c.bf16 %v161_v34, %v160_v33 }
 0x131   :  { %277 = vmatmul.msk.bf16.vlgmr.msra.gmra.mxu2 %vm135_vm1, %v163_v35 }
 0x132   :  { %v156_v36 = vpop.f32.mrf.mxu1 }
 0x133   :  { %v157_v37 = vadd.f32 %v299_v29, %v156_v36 }
 0x135   :  { %v162_v38 = vmax.f32 %v157_v37, 0.0 }
 0x137   :  { %v164_v40 = vpack.c.bf16 %v162_v38, %v162_v38 }
 0x13a   :  { %v158_v39 = vpop.f32.mrf.mxu1 }
 0x141   :  { %278 = vmatmul.msk.bf16.gmra.mxu2 %vm135_vm1, %v164_v40 }
 0x1b4   :  { %v200_v42 = vpop.f32.mrf.mxu2 }
 0x1b5   :  { %v201_v43 = vadd.f32 %v300_v41, %v200_v42 }
 0x1b7   :  { %301 = vtanh.f32 %v201_v43 }
 0x1bc   :  { %v202_v44 = vpop.f32.mrf.mxu2 }
 0x1bd   :  { %v302_v45 = vpop.eup %301  ;;  %v203_v46 = vadd.f32 %v300_v41, %v202_v44 }
 0x1be   :  { %212 = vst.msk [vmem:[#allocation2] sm:$0xff] %vm135_vm1, %v302_v45 }
 0x1bf   :  { %303 = vtanh.f32 %v203_v46 }
 0x1c4   :  { %v205_v47 = vpop.f32.mrf.mxu2 }
 0x1c5   :  { %v304_v48 = vpop.eup %303  ;;  %v206_v49 = vadd.f32 %v300_v41, %v205_v47 }
 0x1c6   :  { %213 = vst.msk [vmem:[#allocation2 + $0x8] sm:$0xff] %vm135_vm1, %v304_v48 }
 0x1c7   :  { %305 = vtanh.f32 %v206_v49 }
 0x1cc   :  { %v207_v50 = vpop.f32.mrf.mxu2 }
 0x1cd   :  { %v306_v51 = vpop.eup %305 }
 0x1ce   :  { %214 = vst.msk [vmem:[#allocation2 + $0x10] sm:$0xff] %vm135_vm1, %v306_v51 }
 0x1cf   :  { %227 = dma.vmem_to_hbm [thread:$0]  %s220_s28, 384, %s222_s6, [#allocation3], %s334_s8, %s334_s8, %s335_s9  }
 0x1d0   :  { %331 = dma.done.wait [#allocation3], 384  }
 0x1d1   :  { %332 = vsyncadd [#allocation3], 4294966912 }
 0x1d2   :  { %232 = vsyncpa [#allocation3], 1 }

</bundles_post_ra>
